<compile_context>
chip_gen: v7x
topology: tpu7x:2x2x1
jax: 0.10.0
libtpu: 0.0.40
codegen_flags: <defaults>
</compile_context>

<pallas_src>
import functools

import jax
import jax.numpy as jnp
import numpy as np
from jax.experimental import pallas as pl
from jax.experimental.pallas import tpu as pltpu


def _event_fn_kernel(x_ref, p_ref, o_ref, *, n_in, n_out):
    """One lane-major tile.

    x_ref: (n_in, tile) VMEM block -- batch on the lane axis.
    p_ref: (n_in*n_out + n_out,) SMEM -- W.T row-major, then bias.
    o_ref: (1, tile) VMEM block -- per-column product of tanh outputs.
    """
    prod = None
    for j in range(n_out):                         # static unroll (n_out == 2)
        # y_j = tanh(sum_i W[j, i] * x[i, :] + b[j]) as a full lane row (VPU
        # scalar-splat FMAs, tanh on the EUP slot).
        y = x_ref[0:1, :].astype(jnp.float32) * p_ref[j]
        for i in range(1, n_in):                   # static unroll (n_in == 2)
            y = y + x_ref[i:i + 1, :].astype(jnp.float32) * p_ref[i * n_out + j]
        y = jnp.tanh(y + p_ref[n_in * n_out + j])
        prod = y if prod is None else prod * y     # exact product over outputs
    o_ref[...] = prod


def prepare_event_fn_params(weight, bias):
    """Pack Linear params once (call outside the solver loop).

    Returns a flat f32 vector [W.T row-major, bias] of length (n_in+1)*n_out.
    """
    w_t = jnp.asarray(weight, jnp.float32).T           # (in, out)
    b = jnp.asarray(bias, jnp.float32).reshape(-1)     # (out,)
    return jnp.concatenate([w_t.reshape(-1), b])


def event_fn_forward_batch(t, states_t, params):
    """Batched EventFn.forward.

    states_t: (n_in, B) lane-major batch of ODE states (do this transpose once
              in the producer, not per call). Any float dtype; math is f32.
    params:   flat vector from prepare_event_fn_params.
    Returns:  (B,) f32 products.
    """
    del t  # unused, as in the PyTorch module
    states_t = jnp.asarray(states_t)
    n_in, B = states_t.shape
    n_out = params.shape[0] // (n_in + 1)

    # Block choice: two 128-aligned "parallel" blocks when B allows it (v7x's
    # two TensorCores split them); otherwise a single full-array block, which
    # needs no (8,128) alignment and therefore no wrapper pad copy for ragged B.
    if B >= 256 and B % 256 == 0:
        num_blocks, tile = 2, B // 2
    else:
        num_blocks, tile = 1, B

    kernel = functools.partial(_event_fn_kernel, n_in=n_in, n_out=n_out)
    itemsize = jnp.dtype(states_t.dtype).itemsize
    out = pl.pallas_call(
        kernel,
        out_shape=jax.ShapeDtypeStruct((1, B), jnp.float32),
        grid=(num_blocks,),
        in_specs=[
            pl.BlockSpec((n_in, tile), lambda i: (0, i)),          # lane-major x
            pl.BlockSpec(memory_space=pltpu.MemorySpace.SMEM),     # 6 scalars
        ],
        out_specs=pl.BlockSpec((1, tile), lambda i: (0, i)),       # lane-dense out
        compiler_params=pltpu.CompilerParams(
            dimension_semantics=("parallel",)),
        cost_estimate=pl.CostEstimate(
            flops=B * (2 * n_in * n_out + n_out - 1),
            transcendentals=B * n_out,
            bytes_accessed=B * (n_in * itemsize + 4) + 4 * int(params.shape[0])),
    )(states_t, params)
    return out[0, :]


def event_fn_forward(t, state, params):
    """Mirrors EventFn.forward for one state: prod(tanh(Linear(state[0])))."""
    del t
    x = jnp.asarray(state[0], jnp.float32).reshape(-1)   # (n_in,)
    n_in = x.shape[0]
    n_out = params.shape[0] // (n_in + 1)
    w_t = params[: n_in * n_out].reshape(n_in, n_out)
    b = params[n_in * n_out:]
    # B == 1 fast path: a pallas launch here is pure launch/DMA overhead for
    # nanoseconds of math; plain jnp fuses into the surrounding solver step.
    return jnp.prod(jnp.tanh(x @ w_t + b))


if __name__ == "__main__":
    key = jax.random.PRNGKey(0)
    k_w, k_x, k_b = jax.random.split(key, 3)

    # EventFn.__init__: nn.Linear(2, 2) with weight ~ N(0, 10), bias = 0.
    weight = 10.0 * jax.random.normal(k_w, (2, 2), jnp.float32)   # (out, in)
    bias = jnp.zeros((2,), jnp.float32)
    params = prepare_event_fn_params(weight, bias)   # packed once, outside loop

    t = jnp.float32(0.0)

    # Single-state call signature forward(t, state): jnp fast path.
    state0 = jax.random.normal(k_x, (2,), jnp.float32)
    res1 = jax.block_until_ready(event_fn_forward(t, (state0,), params))
    ref1 = jnp.prod(jnp.tanh(state0 @ weight.T + bias))
    assert np.allclose(np.asarray(res1), np.asarray(ref1), rtol=1e-5, atol=1e-5), (
        float(res1), float(ref1))

    # Batched Pallas path, lane-major (n_in, B). B = 512 -> two parallel blocks.
    xb_t = jax.random.normal(k_b, (2, 512), jnp.float32)
    outb = jax.block_until_ready(event_fn_forward_batch(t, xb_t, params))
    refb = jnp.prod(jnp.tanh(xb_t.T @ weight.T + bias), axis=-1)
    assert np.allclose(np.asarray(outb), np.asarray(refb), rtol=1e-5, atol=1e-5)

    # Ragged batch -> single full-array block, no wrapper pad copy.
    xr_t = jax.random.normal(jax.random.PRNGKey(2), (2, 37), jnp.float32)
    outr = jax.block_until_ready(event_fn_forward_batch(t, xr_t, params))
    refr = jnp.prod(jnp.tanh(xr_t.T @ weight.T + bias), axis=-1)
    assert np.allclose(np.asarray(outr), np.asarray(refr), rtol=1e-5, atol=1e-5)

    print("KERNEL_OK")
</pallas_src>

<mosaic_0001>
module attributes {stable_mosaic.version = 11 : i64} {
  func.func @_event_fn_kernel(%arg0: i32, %arg1: memref<2x256xf32, #tpu.memory_space<vmem>>, %arg2: memref<6xf32, #tpu.memory_space<smem>>, %arg3: memref<1x256xf32, #tpu.memory_space<vmem>>) attributes {dimension_semantics = [#tpu.dimension_semantics<parallel>], iteration_bounds = array<i64: 2>, scalar_prefetch = 0 : i64, scratch_operands = 0 : i64, tpu.core_type = #tpu.core_type<tc>, window_params = [{transform_indices = @transform_0, window_bounds = array<i64: 2, 256>}, {transform_indices = @transform_1, window_bounds = array<i64: 6>}, {transform_indices = @transform_2, window_bounds = array<i64: 1, 256>}]} {
    %c0 = arith.constant 0 : index
    %c0_0 = arith.constant 0 : index
    %0 = vector.load %arg1[%c0, %c0_0] : memref<2x256xf32, #tpu.memory_space<vmem>>, vector<1x256xf32>
    %c0_1 = arith.constant 0 : index
    %1 = memref.load %arg2[%c0_1] : memref<6xf32, #tpu.memory_space<smem>>
    %2 = vector.broadcast %1 : f32 to vector<1x256xf32>
    %3 = arith.mulf %0, %2 : vector<1x256xf32>
    %c1 = arith.constant 1 : index
    %c0_2 = arith.constant 0 : index
    %4 = vector.load %arg1[%c1, %c0_2] : memref<2x256xf32, #tpu.memory_space<vmem>>, vector<1x256xf32>
    %c2 = arith.constant 2 : index
    %5 = memref.load %arg2[%c2] : memref<6xf32, #tpu.memory_space<smem>>
    %6 = vector.broadcast %5 : f32 to vector<1x256xf32>
    %7 = arith.mulf %4, %6 : vector<1x256xf32>
    %8 = arith.addf %3, %7 : vector<1x256xf32>
    %c4 = arith.constant 4 : index
    %9 = memref.load %arg2[%c4] : memref<6xf32, #tpu.memory_space<smem>>
    %10 = vector.broadcast %9 : f32 to vector<1x256xf32>
    %11 = arith.addf %8, %10 : vector<1x256xf32>
    %12 = math.tanh %11 : vector<1x256xf32>
    %c0_3 = arith.constant 0 : index
    %c0_4 = arith.constant 0 : index
    %13 = vector.load %arg1[%c0_3, %c0_4] : memref<2x256xf32, #tpu.memory_space<vmem>>, vector<1x256xf32>
    %c1_5 = arith.constant 1 : index
    %14 = memref.load %arg2[%c1_5] : memref<6xf32, #tpu.memory_space<smem>>
    %15 = vector.broadcast %14 : f32 to vector<1x256xf32>
    %16 = arith.mulf %13, %15 : vector<1x256xf32>
    %c1_6 = arith.constant 1 : index
    %c0_7 = arith.constant 0 : index
    %17 = vector.load %arg1[%c1_6, %c0_7] : memref<2x256xf32, #tpu.memory_space<vmem>>, vector<1x256xf32>
    %c3 = arith.constant 3 : index
    %18 = memref.load %arg2[%c3] : memref<6xf32, #tpu.memory_space<smem>>
    %19 = vector.broadcast %18 : f32 to vector<1x256xf32>
    %20 = arith.mulf %17, %19 : vector<1x256xf32>
    %21 = arith.addf %16, %20 : vector<1x256xf32>
    %c5 = arith.constant 5 : index
    %22 = memref.load %arg2[%c5] : memref<6xf32, #tpu.memory_space<smem>>
    %23 = vector.broadcast %22 : f32 to vector<1x256xf32>
    %24 = arith.addf %21, %23 : vector<1x256xf32>
    %25 = math.tanh %24 : vector<1x256xf32>
    %26 = arith.mulf %12, %25 : vector<1x256xf32>
    %c0_8 = arith.constant 0 : index
    %c0_9 = arith.constant 0 : index
    %27 = vector.load %arg3[%c0_8, %c0_9] : memref<1x256xf32, #tpu.memory_space<vmem>>, vector<1x256xf32>
    tpu.vector_store %arg3[%c0_8, %c0_9], %26 {strides = array<i32>} : memref<1x256xf32, #tpu.memory_space<vmem>>, vector<1x256xf32>,
    return
  }
  func.func @transform_0(%arg0: i32) -> (i32, i32) {
    %c0_i32 = arith.constant 0 : i32
    %c0_i32_0 = arith.constant 0 : i32
    return %c0_i32, %arg0 : i32, i32
  }
  func.func @transform_1(%arg0: i32) -> i32 {
    %c0_i32 = arith.constant 0 : i32
    %c0_i32_0 = arith.constant 0 : i32
    return %c0_i32 : i32
  }
  func.func @transform_2(%arg0: i32) -> (i32, i32) {
    %c0_i32 = arith.constant 0 : i32
    %c0_i32_0 = arith.constant 0 : i32
    return %c0_i32, %arg0 : i32, i32
  }
}

</mosaic_0001>

<bundles_post_ra>
// kernel: tpu_custom_call.1
= control target key start
LH: loop header
LB: loop body
LE: loop exit
PB: predicated region body
PF: predicated region fallthrough
CT: control target
= control target key end

     0   :  { %7 = vsyncpa [#allocation3], 0  ;;  %s717_s0 = inlined_call_operand.hbm [shape: f32[2,512], index: 0, kind: input, shape index: {}]   ;;  %s718_s1 = inlined_call_operand.vmem [shape: f32[6], index: 1, kind: input, shape index: {}]   ;;  %s719_s2 = inlined_call_operand.hbm [shape: f32[1,512], index: 2, kind: output, shape index: {}]  }
   0x1   :  { %9 = vsyncpa [#allocation3 + $0x1], 0 }
   0x2   :  { %10 = vsyncpa [#allocation5], 0 }
   0x3   :  { %11 = vsyncpa [#allocation4], 0 }
   0x4   :  { %13 = vsyncpa [#allocation4 + $0x1], 0  ;;  %s524_s9 = smov 0   ;;  %s526_s10 = smov 0  }
   0x5   :  { %s528_s11 = smov 0   ;;  %s530_s12 = smov 0  }
   0x6 LB: > { %s545_s13 = sadd.s32 4294967295, %s504_s12   ;;  %s304_s14 = sadd.s32 4294967294, %s504_s12   ;;  %s504_s12 = sphi %s530_s12, %s740_s12   ;;  %s500_s11 = sphi %s528_s11, %s739_s11   ;;  %s496_s10 = sphi %s526_s10, %s738_s10   ;;  %s492_s9 = sphi %s524_s9, %s737_s9  }
   0x7   : > { %p39_p0 = scmp.ne.s32.totalorder %s496_s10, %s492_s9  ;;  %p720_p1 = scmp.eq.s32.totalorder %s545_s13, 0 }
   0x8   : > { %p90_p3 = scmp.eq.s32.totalorder %s304_s14, 1  ;;  %p305_p5 = scmp.ge.s32.totalorder %s504_s12, 1 }
   0x9   : > { %p554_p4 = por %p720_p1, %p39_p0  ;;  %p97_p7 = scmp.lt.s32.totalorder %s504_s12, 3 }
   0xa   : > { %p559_p6 = por %p90_p3, %p39_p0  ;;  %s110_s19 = sshll.u32 %s718_s1, 4  ;;  %s111_s19 = int_to_ptr.vmem [resolvable:$true] %s110_s19 }
   0xb   : > { %s723_s15 = scalar_select %p554_p4, 1, 0 }
   0xc   : > { %s724_s16 = scalar_select %p559_p6, 1, 0 }
   0xd   : > { %p567_p8 = pnand %p305_p5, %p97_p7  ;;  %s575_s21 = sadd.s32 1, %s504_s12  }
   0xe   : > { %s23_s23 = ssub.s32 %s504_s12, %s575_s21  ;;  %s26_s25 = sadd.s32 1, %s500_s11 }
   0xf   : > { %p336_p10 = pneg %p567_p8  ;;  %p585_p12 = scmp.eq.s32.totalorder %s23_s23, 0 }
  0x10   : > { %p33_p13 = scmp.ne.s32.totalorder %s500_s11, %s496_s10  ;;  %s389_s26 = scalar_lea.vmem %s111_s19, 16 }
  0x11   : > { %p579_p11 = pnand %p336_p10, %p720_p1  ;;  %p390_p0 = scmp.ne.s32.totalorder %s111_s19, %s389_s26 }
  0x12   : > { %p397_p9 = scmp.lt.s32.totalorder %s111_s19, %s111_s19  ;;  %p398_p2 = scmp.lt.s32.totalorder %s389_s26, %s389_s26 }
  0x13   : > { %p391_p3 = pneg %p579_p11 }
  0x14   : > { %p399_p10 = por %p398_p2, %p397_p9 }
  0x15   : > { %p392_p5 = pnand %p391_p3, %p390_p0 }
  0x17   : > { %p393_p7 = pneg %p392_p5 }
  0x19   : > { %p400_p1 = pnand %p399_p10, %p393_p7 }
  0x1b   : > { %403 = shalt.err (!%p400_p1)
}
  0x1c   : > { %s506_s27 = smov [#allocation6]   ;;  %p34_p2 = scmp.eq.s32.totalorder %s504_s12, 0 }
  0x1d   : > { %339 = dma.vmem_to_smem (!%p579_p11), %s111_s19, 16, %s506_s27, [#allocation5]  }
  0x1e   : > { %s599_s28 = scalar_select %p585_p12, %s500_s11, %s26_s25  }
  0x1f   : > { %p728_p1 = scmp.eq.s32.totalorder %s545_s13, 1  ;;  %p349_p0 = scmp.lt.s32.totalorder %s504_s12, 2 }
  0x20   : > { %s121_s30 = sand.u32 1, %s500_s11   ;;  %p35_p3 = por %p34_p2, %p33_p13 }
  0x21   : > { %p607_p9 = por %p728_p1, %p33_p13  ;;  %s308_s3 = sshll.u32 %s121_s30, 2 }
  0x22   : > { %s326_s4 = sshll.u32 %s504_s12, 6  ;;  %s125_s8 = scalar_lea.vmem [#allocation2], %s308_s3 }
  0x23   : > { %s729_s29 = scalar_select %p607_p9, 1, 0 }
  0x24   : > { %s620_s7 = scalar_lea.hbm %s717_s0, %s326_s4  ;;  %s133_s14 = sshll.u32 %s125_s8, 4  ;;  %s626_s14 = int_to_ptr.vmem [resolvable:$true] %s133_s14 }
  0x25   : > { %p622_p11 = pnand %p349_p0, %p35_p3  ;;  %s122_s18 = scalar_lea.sflag [#allocation3], %s121_s30 }
  0x26   : > { %s404_s19 = scalar_lea.hbm %s620_s7, 64  ;;  %s409_s24 = scalar_lea.hbm %s717_s0, 128 }
  0x27   : > { %p405_p12 = scmp.ne.s32.totalorder %s620_s7, %s404_s19  ;;  %p406_p13 = pneg %p622_p11 }
  0x28   : > { %p410_p10 = scmp.lt.u32.totalorder %s620_s7, %s717_s0  ;;  %p411_p2 = scmp.lt.u32.totalorder %s409_s24, %s404_s19 }
  0x29   : > { %p407_p5 = pnand %p406_p13, %p405_p12  ;;  %p413_p0 = scmp.lt.u32.totalorder %s404_s19, %s620_s7 }
  0x2a   : > { %p412_p1 = por %p411_p2, %p410_p10 }
  0x2b   : > { %p408_p7 = pneg %p407_p5 }
  0x2c   : > { %p414_p3 = por %p413_p0, %p412_p1 }
  0x2e   : > { %p415_p6 = pnand %p414_p3, %p408_p7 }
  0x30   : > { %418 = shalt.err (!%p415_p6)
}
  0x31   : > { %s419_s27 = scalar_lea.vmem %s626_s14, 64  ;;  %s507_s30 = smov [#allocation2]  }
  0x32   : > { %p420_p12 = scmp.ne.s32.totalorder %s626_s14, %s419_s27  ;;  %s424_s3 = sshll.u32 %s507_s30, 4  ;;  %s425_s3 = int_to_ptr.vmem [resolvable:$false] %s424_s3 }
  0x33   : > { %s426_s4 = scalar_lea.vmem %s425_s3, 128  ;;  %p427_p4 = scmp.lt.s32.totalorder %s626_s14, %s425_s3 }
  0x34   : > { %p422_p5 = pnand %p420_p12, %p406_p13  ;;  %p428_p10 = scmp.lt.s32.totalorder %s426_s4, %s419_s27 }
  0x36   : > { %p423_p9 = pneg %p422_p5  ;;  %p429_p2 = por %p428_p10, %p427_p4 }
  0x38   : > { %p430_p1 = pnand %p429_p2, %p423_p9 }
  0x3a   : > { %433 = shalt.err (!%p430_p1)
}
  0x3b   : > { %343 = dma.hbm_to_vmem [thread:$0]  (!%p622_p11), %s620_s7, 64, %s626_s14, %s122_s18  }
  0x3c   : > { %142 = sbr.rel (%p567_p8) target bundleno = 116 (0x74), region = 28  ;;  %s656_s5 = sand.u32 (!%p567_p8), 1, %s496_s10  }
  0x3d   : > { %s312_s6 = sshll.u32 (!%p567_p8), %s656_s5, 2  ;;  %s145_s8 = scalar_lea.sflag (!%p567_p8), [#allocation3], %s656_s5 }
  0x3e   : > { %s148_s19 = scalar_lea.vmem (!%p567_p8), [#allocation2], %s312_s6  ;;  %p731_p4 = scmp.ne.s32.totalorder (!%p567_p8), %s723_s15, 0 }
  0x43   : > { %479 = dma.done.wait (%p731_p4), %s145_s8, 64  }
  0x44   : > { %481 = vsyncadd (%p731_p4), %s145_s8, 4294967232  ;;  %p732_p6 = scmp.eq.s32.totalorder %s545_s13, 0 }
  0x46   : > { %483 = dma.done.wait (%p732_p6), [#allocation5], 16   ;;  %p733_p9 = pmov %p732_p6 }
  0x48   : > { %485 = vsyncadd (%p733_p9), [#allocation5], 4294967280 }
  0x49   : > { %157 = sfence }
  0x4a   : > { %s177_s20 = sld [smem:[#allocation6]]  ;;  %s316_s7 = sld [smem:[#allocation6 + $0x2]]  ;;  %v176_v0 = vld [vmem:[%s148_s19] ss:$2 sm:$0x3]  ;;  %v202_v16 = vlaneseq }
  0x4b   : > { %s317_s14 = sld [smem:[#allocation6 + $0x4]]  ;;  %s318_s17 = sld [smem:[#allocation6 + $0x1]]  ;;  %v315_v1 = vld [vmem:[%s148_s19 + $0x1] ss:$2 sm:$0x3] }
  0x4c   : > { %s319_s18 = sld [smem:[#allocation6 + $0x3]]  ;;  %s320_s22 = sld [smem:[#allocation6 + $0x5]]  ;;  %vm204_vm0 = vcmp.lt.s32.totalorder %v202_v16, 256 }
  0x4d   : > { %s314_s15 = sshll.u32 %s656_s5, 1  ;;  %s327_s25 = sshll.u32 %s545_s13, 5 }
  0x4e   : > { %s173_s23 = scalar_lea.vmem [#allocation7], %s314_s15  ;;  %s675_s30 = scalar_lea.hbm %s719_s2, %s327_s25 }
  0x4f   : > { %s222_s24 = sshll.u32 %s173_s23, 4  ;;  %s208_s3 = scalar_lea.sflag [#allocation4], %s656_s5  ;;  %s670_s24 = int_to_ptr.vmem [resolvable:$true] %s222_s24 }
  0x50   : > { %v178_v2 = vstv %s177_s20  ;;  %v183_v4 = vstv %s316_s7  ;;  %s434_s4 = scalar_lea.vmem %s670_s24, 32  ;;  %p734_p11 = scmp.ne.s32.totalorder %s729_s29, 0 }
  0x51   : > { %v179_v3 = vmul.f32 %v178_v2, %v176_v0  ;;  %v184_v5 = vmul.f32 %v315_v1, %v183_v4  ;;  %v191_v6 = vstv %s318_s17  ;;  %v187_v7 = vstv %s317_s14  ;;  %p435_p8 = scmp.ne.s32.totalorder %s670_s24, %s434_s4  ;;  %s508_s13 = smov [#allocation7]  }
  0x52   : > { %v192_v8 = vmul.f32 %v191_v6, %v176_v0  ;;  %v194_v9 = vstv %s319_s18  ;;  %v198_v12 = vstv %s320_s22  ;;  %s438_s6 = sshll.u32 %s508_s13, 4  ;;  %s439_s6 = int_to_ptr.vmem [resolvable:$false] %s438_s6 }
  0x53   : > { %v185_v10 = vadd.f32 %v184_v5, %v179_v3  ;;  %v195_v11 = vmul.f32 %v315_v1, %v194_v9  ;;  %p436_p13 = pnand %p435_p8, %p734_p11  ;;  %s440_s8 = scalar_lea.vmem %s439_s6, 64 }
  0x54   : > { %p441_p0 = scmp.lt.s32.totalorder %s670_s24, %s439_s6  ;;  %p442_p3 = scmp.lt.s32.totalorder %s440_s8, %s434_s4 }
  0x55   : > { %v188_v13 = vadd.f32 %v187_v7, %v185_v10  ;;  %v196_v14 = vadd.f32 %v195_v11, %v192_v8  ;;  %p437_p7 = pneg %p436_p13 }
  0x56   : > { %p443_p12 = por %p442_p3, %p441_p0 }
  0x57   : > { %385 = vtanh.f32 %v188_v13  ;;  %v199_v15 = vadd.f32 %v198_v12, %v196_v14 }
  0x58   : > { %p444_p5 = pnand %p443_p12, %p437_p7 }
  0x59   : > { %387 = vtanh.f32 %v199_v15 }
  0x61   : > { %v386_v17 = vpop.eup %385 }
  0x63   : > { %v388_v18 = vpop.eup %387 }
  0x64   : > { %v201_v19 = vmul.f32 %v388_v18, %v386_v17 }
  0x66   : > { %206 = vst.msk [vmem:[%s173_s23] sm:$0x3] %vm204_vm0, %v201_v19 }
  0x67   : > { %447 = shalt.err (!%p444_p5)
}
  0x68   : > { %s448_s5 = scalar_lea.hbm %s675_s30, 32  ;;  %s452_s7 = scalar_lea.hbm %s719_s2, 64 }
  0x69   : > { %p449_p10 = scmp.ne.s32.totalorder %s675_s30, %s448_s5  ;;  %p453_p4 = scmp.lt.u32.totalorder %s675_s30, %s719_s2 }
  0x6a   : > { %p454_p6 = scmp.lt.u32.totalorder %s452_s7, %s448_s5  ;;  %p456_p8 = scmp.lt.u32.totalorder %s448_s5, %s675_s30 }
  0x6b   : > { %p450_p2 = pnand %p449_p10, %p734_p11 }
  0x6c   : > { %p455_p9 = por %p454_p6, %p453_p4 }
  0x6d   : > { %p451_p1 = pneg %p450_p2 }
  0x6e   : > { %p457_p13 = por %p456_p8, %p455_p9 }
  0x70   : > { %p458_p7 = pnand %p457_p13, %p451_p1 }
  0x72   : > { %461 = shalt.err (!%p458_p7)
}
  0x73   : > { %334 = dma.vmem_to_hbm [thread:$0]  (%p734_p11), %s670_s24, 32, %s675_s30, %s208_s3  }
  0x74 PF: > { %s234_s18 = sand.u32 1, %s492_s9   ;;  %p735_p0 = scmp.ne.s32.totalorder %s724_s16, 0 }
  0x75   : > { %p736_p3 = scmp.ge.s32.totalorder %s504_s12, 2  ;;  %s235_s22 = scalar_lea.sflag [#allocation4], %s234_s18 }
  0x77   : > { %p345_p12 = pnand %p736_p3, %p735_p0 }
  0x79   : > { %487 = dma.done.wait (!%p345_p12), %s235_s22, 32  }
  0x7a   : > { %489 = vsyncadd (!%p345_p12), %s235_s22, 4294967264  ;;  %p16_p5 = scmp.ge.s32.totalorder %s575_s21, 4   ;;  %s737_s9 = smov %s496_s10 }
  0x7b   : > { %s738_s10 = smov %s500_s11  ;;  %s739_s11 = smov %s599_s28 }
  0x7c   : > { %s740_s12 = smov %s575_s21  ;;  %18 = sbr.rel (!%p16_p5) target bundleno = 6 (0x6), region = 79 }
  0x83   :  { %240 = vsyncpa [#allocation3], 1 }
  0x84   :  { %242 = vsyncpa [#allocation3 + $0x1], 1 }
  0x85   :  { %243 = vsyncpa [#allocation4], 1 }
  0x86   :  { %245 = vsyncpa [#allocation4 + $0x1], 1 }
  0x87   :  { %246 = vsyncpa [#allocation5], 1 }
  0x88   :  { %248 = vsyncpa [#allocation5 + $0x1], 1 }

</bundles_post_ra>
